<compile_context>
chip_gen: v7x
topology: tpu7x:2x2x1
jax: 0.10.0
libtpu: 0.0.40
codegen_flags: <defaults>
</compile_context>

<pallas_src>
import jax
import jax.numpy as jnp
from jax import lax
from jax.experimental import pallas as pl
from jax.experimental.pallas import tpu as pltpu  # noqa: F401  (not required by this fused design)

# ---------------------------------------------------------------------------
# Problem configuration (small, synthetic)
# ---------------------------------------------------------------------------
B = 4                  # batch
C_IN = 4               # input channels
H = W = 16             # spatial
FEAT = 512             # feature width produced by features_2
# num_classes[0] = finest level (classifier_5) ... num_classes[4] = coarsest (classifier_1)
NUM_CLASSES = [10, 8, 6, 4, 2]
# classifier_k (k=1..5) consumes x[:, OFFSETS[k-1]:512]
OFFSETS = [0, 102, 204, 306, 409]
DIMS = [512, 410, 308, 206, 103]
# classes per classifier (classifier_1 .. classifier_5)
NCLS = [NUM_CLASSES[4], NUM_CLASSES[3], NUM_CLASSES[2], NUM_CLASSES[1], NUM_CLASSES[0]]
CMAX = max(NCLS)               # 10
NLEVELS = 5

OUT_LANES = 128                # lane-dense output / packed-head width
LOSS_COL = NLEVELS * CMAX      # 50: first loss lane
PRED_COL = LOSS_COL + NLEVELS  # 55: first pred lane
NEG = -1e30                    # finite mask value (must stay finite for CE term)


# ---------------------------------------------------------------------------
# Fused kernel: backbone stand-in + 5 heads + cross-entropy + argmax
# Single invocation, no grid; everything fits trivially in VMEM (<1 MiB).
# ---------------------------------------------------------------------------
def _fused_kernel(x_ref, wf_ref, bf_ref, w_ref, b_ref, oh_ref, out_ref):
    # ---- backbone stand-in: GAP over H*W -> Linear(C_IN, 512) -> ReLU ------
    x = x_ref[...]                                   # (B, C_IN, H*W)
    pooled = jnp.mean(x, axis=-1)                    # (B, C_IN)
    feat = jnp.dot(pooled, wf_ref[...],
                   preferred_element_type=jnp.float32) + bf_ref[...]
    feat = jnp.maximum(feat, 0.0)                    # (B, FEAT)

    # ---- all 5 classifier heads in ONE (B,512)@(512,128) MXU pass ----------
    # Packed weights: level k occupies lanes [k*CMAX, k*CMAX+NCLS[k]).
    # Intra-level pad lanes carry bias -1e30 (logits arrive pre-masked);
    # lanes >= 50 carry zero weights/bias (scratch lanes for loss/pred packing).
    logits = jnp.dot(feat, w_ref[...],
                     preferred_element_type=jnp.float32) + b_ref[...]   # (B, 128)

    oh = oh_ref[...]                                 # (B, 128) packed one-hot targets
    prod = oh * logits                               # finite: oh == 0 on masked lanes

    lane = lax.broadcasted_iota(jnp.int32, (B, OUT_LANES), 1)

    out = logits
    for k in range(NLEVELS):                         # trace-time unrolled; tiny VPU work
        lo = k * CMAX
        in_seg = (lane >= lo) & (lane < lo + CMAX)
        lg = jnp.where(in_seg, logits, NEG)          # (B, 128) segment-masked logits
        m = jnp.max(lg, axis=-1, keepdims=True)      # (B, 1) per-sample segment max
        lse = m + jnp.log(jnp.sum(jnp.exp(lg - m), axis=-1, keepdims=True))
        tgt = jnp.sum(jnp.where(in_seg, prod, 0.0), axis=-1, keepdims=True)
        loss_k = lse - tgt                           # per-sample CE, (B, 1)
        # argmax with first-index tie-break (matches torch.argmax); exact f32
        # equality is fine because lg == m comes from the same f32 array.
        pred_k = (jnp.min(jnp.where(lg == m, lane, OUT_LANES),
                          axis=-1, keepdims=True) - lo).astype(jnp.float32)
        # pack loss / pred into scratch lanes (those lanes of `logits` are 0)
        out = out + loss_k * (lane == (LOSS_COL + k)).astype(jnp.float32)
        out = out + pred_k * (lane == (PRED_COL + k)).astype(jnp.float32)

    out_ref[...] = out                               # single lane-dense (B, 128) store


def fused_forward_slab(x_flat, wf, bf, w_cat, b_cat, onehot):
    return pl.pallas_call(
        _fused_kernel,
        out_shape=jax.ShapeDtypeStruct((B, OUT_LANES), jnp.float32),
    )(x_flat, wf, bf, w_cat, b_cat, onehot)


# ---------------------------------------------------------------------------
# Parameter construction (deterministic, synthetic)
# ---------------------------------------------------------------------------
def init_params(key):
    keys = jax.random.split(key, 2 + 2 * NLEVELS)
    wf = jax.random.normal(keys[0], (C_IN, FEAT), jnp.float32) * 0.05
    bf = jax.random.normal(keys[1], (1, FEAT), jnp.float32) * 0.05

    w_cat = jnp.zeros((FEAT, OUT_LANES), jnp.float32)
    b_cat = jnp.zeros((1, OUT_LANES), jnp.float32)
    # pre-mask all intra-level pad lanes; lanes >= 50 stay 0 (loss/pred scratch)
    b_cat = b_cat.at[0, :NLEVELS * CMAX].set(NEG)
    for k in range(NLEVELS):
        wk = jax.random.normal(keys[2 + 2 * k], (DIMS[k], NCLS[k]), jnp.float32) * 0.05
        bk = jax.random.normal(keys[3 + 2 * k], (NCLS[k],), jnp.float32) * 0.05
        lo = k * CMAX
        w_cat = w_cat.at[OFFSETS[k]:, lo:lo + NCLS[k]].set(wk)
        b_cat = b_cat.at[0, lo:lo + NCLS[k]].set(bk)
    return wf, bf, w_cat, b_cat


# ---------------------------------------------------------------------------
# Full forward (mirrors WideResNet_flamingo_l5.forward)
# ---------------------------------------------------------------------------
@jax.jit
def forward(x_nchw, targets, wf, bf, w_cat, b_cat):
    x_flat = x_nchw.reshape(B, C_IN, H * W).astype(jnp.float32)

    # hierarchical targets (stand-in for get_targets); level 4 = classifier_5 uses raw targets
    level_targets = jnp.stack(
        [targets % NCLS[k] for k in range(NLEVELS - 1)] + [targets], axis=0)   # (5, B)

    # one-hot targets, packed into the 128-wide lane layout (level k -> lanes k*CMAX + t)
    packed_idx = level_targets + (jnp.arange(NLEVELS, dtype=jnp.int32) * CMAX)[:, None]
    onehot = jax.nn.one_hot(packed_idx, OUT_LANES, dtype=jnp.float32).sum(axis=0)  # (B, 128)

    slab = fused_forward_slab(x_flat, wf, bf, w_cat, b_cat, onehot)   # (B, 128)

    loss_ps = slab[:, LOSS_COL:LOSS_COL + NLEVELS]                    # (B, 5) per-sample CE
    preds = slab[:, PRED_COL:PRED_COL + NLEVELS].astype(jnp.int32)    # (B, 5) argmax

    loss_per_level = jnp.mean(loss_ps, axis=0)                        # mean CE per classifier
    total_loss = jnp.sum(loss_per_level)                              # ce_l1 + ... + ce_l5

    correct = preds.T == level_targets                                # (5, B)
    acc_per_level = jnp.mean(correct.astype(jnp.float32), axis=1) * 100.0

    # forward-pass-agreement across all 5 levels, as in the reference
    fpa = jnp.all(correct, axis=0)                                    # (B,)
    fpa_rate = jnp.sum(fpa.astype(jnp.float32)) / fpa.shape[0]

    l5_out = slab[:, 4 * CMAX:4 * CMAX + NUM_CLASSES[0]]              # returned logits (B, 10)
    return l5_out, total_loss, loss_per_level, acc_per_level, fpa_rate


if __name__ == "__main__":
    key = jax.random.PRNGKey(0)
    k_x, k_t, k_p = jax.random.split(key, 3)

    x = jax.random.normal(k_x, (B, C_IN, H, W), jnp.float32)          # NCHW, like PyTorch
    targets = jax.random.randint(k_t, (B,), 0, NUM_CLASSES[0], jnp.int32)
    wf, bf, w_cat, b_cat = init_params(k_p)

    l5_out, total_loss, losses, accs, fpa = forward(x, targets, wf, bf, w_cat, b_cat)
    jax.block_until_ready((l5_out, total_loss, losses, accs, fpa))

    assert l5_out.shape == (B, NUM_CLASSES[0])
    assert bool(jnp.isfinite(total_loss))
    print("KERNEL_OK")
</pallas_src>

<mosaic_0001>
module attributes {stable_mosaic.version = 11 : i64} {
  func.func @_fused_kernel(%arg0: memref<4x4x256xf32, #tpu.memory_space<vmem>>, %arg1: memref<4x512xf32, #tpu.memory_space<vmem>>, %arg2: memref<1x512xf32, #tpu.memory_space<vmem>>, %arg3: memref<512x128xf32, #tpu.memory_space<vmem>>, %arg4: memref<1x128xf32, #tpu.memory_space<vmem>>, %arg5: memref<4x128xf32, #tpu.memory_space<vmem>>, %arg6: memref<4x128xf32, #tpu.memory_space<vmem>>) attributes {dimension_semantics = [], scalar_prefetch = 0 : i64, scratch_operands = 0 : i64, tpu.core_type = #tpu.core_type<tc>} {
    %c0 = arith.constant 0 : index
    %c0_0 = arith.constant 0 : index
    %c0_1 = arith.constant 0 : index
    %0 = vector.load %arg0[%c0, %c0_0, %c0_1] : memref<4x4x256xf32, #tpu.memory_space<vmem>>, vector<4x4x256xf32>
    %cst = arith.constant dense<0.000000e+00> : vector<4x4xf32>
    %1 = vector.multi_reduction <add>, %0, %cst [2] : vector<4x4x256xf32> to vector<4x4xf32>
    %cst_2 = arith.constant 2.560000e+02 : f32
    %2 = vector.broadcast %cst_2 : f32 to vector<4x4xf32>
    %3 = arith.divf %1, %2 : vector<4x4xf32>
    %c0_3 = arith.constant 0 : index
    %c0_4 = arith.constant 0 : index
    %4 = vector.load %arg1[%c0_3, %c0_4] : memref<4x512xf32, #tpu.memory_space<vmem>>, vector<4x512xf32>
    %cst_5 = arith.constant dense<0.000000e+00> : vector<4x512xf32>
    %5 = tpu.matmul %3, %4, %cst_5 {dimension_numbers = #tpu.dot_dimension_numbers<[1], [0], [0], [1], [0, 0, 1, 1], [], []>} : vector<4x4xf32>, vector<4x512xf32>, vector<4x512xf32> -> vector<4x512xf32>
    %c0_6 = arith.constant 0 : index
    %c0_7 = arith.constant 0 : index
    %6 = vector.load %arg2[%c0_6, %c0_7] : memref<1x512xf32, #tpu.memory_space<vmem>>, vector<1x512xf32>
    %7 = vector.broadcast %6 : vector<1x512xf32> to vector<4x512xf32>
    %8 = arith.addf %5, %7 : vector<4x512xf32>
    %cst_8 = arith.constant 0.000000e+00 : f32
    %9 = vector.broadcast %cst_8 : f32 to vector<4x512xf32>
    %10 = arith.maximumf %8, %9 : vector<4x512xf32>
    %c0_9 = arith.constant 0 : index
    %c0_10 = arith.constant 0 : index
    %11 = vector.load %arg3[%c0_9, %c0_10] : memref<512x128xf32, #tpu.memory_space<vmem>>, vector<512x128xf32>
    %cst_11 = arith.constant dense<0.000000e+00> : vector<4x128xf32>
    %12 = tpu.matmul %10, %11, %cst_11 {dimension_numbers = #tpu.dot_dimension_numbers<[1], [0], [0], [1], [0, 0, 1, 1], [], []>} : vector<4x512xf32>, vector<512x128xf32>, vector<4x128xf32> -> vector<4x128xf32>
    %c0_12 = arith.constant 0 : index
    %c0_13 = arith.constant 0 : index
    %13 = vector.load %arg4[%c0_12, %c0_13] : memref<1x128xf32, #tpu.memory_space<vmem>>, vector<1x128xf32>
    %14 = vector.broadcast %13 : vector<1x128xf32> to vector<4x128xf32>
    %15 = arith.addf %12, %14 : vector<4x128xf32>
    %c0_14 = arith.constant 0 : index
    %c0_15 = arith.constant 0 : index
    %16 = vector.load %arg5[%c0_14, %c0_15] : memref<4x128xf32, #tpu.memory_space<vmem>>, vector<4x128xf32>
    %17 = arith.mulf %16, %15 : vector<4x128xf32>
    %18 = tpu.iota {dimensions = array<i32: 1>} : vector<4x128xi32>
    %c0_i32 = arith.constant 0 : i32
    %19 = vector.broadcast %c0_i32 : i32 to vector<4x128xi32>
    %20 = arith.cmpi sge, %18, %19 : vector<4x128xi32>
    %c10_i32 = arith.constant 10 : i32
    %21 = vector.broadcast %c10_i32 : i32 to vector<4x128xi32>
    %22 = arith.cmpi slt, %18, %21 : vector<4x128xi32>
    %23 = arith.andi %20, %22 : vector<4x128xi1>
    %cst_16 = arith.constant -1.000000e+30 : f32
    %24 = vector.broadcast %cst_16 : f32 to vector<4x128xf32>
    %25 = arith.select %23, %15, %24 : vector<4x128xi1>, vector<4x128xf32>
    %cst_17 = arith.constant dense<0xFF800000> : vector<4xf32>
    %26 = vector.multi_reduction <maximumf>, %25, %cst_17 [1] : vector<4x128xf32> to vector<4xf32>
    %27 = vector.shape_cast %26 : vector<4xf32> to vector<4x1xf32>
    %28 = vector.broadcast %27 : vector<4x1xf32> to vector<4x128xf32>
    %29 = arith.subf %25, %28 : vector<4x128xf32>
    %30 = math.exp %29 : vector<4x128xf32>
    %cst_18 = arith.constant dense<0.000000e+00> : vector<4xf32>
    %31 = vector.multi_reduction <add>, %30, %cst_18 [1] : vector<4x128xf32> to vector<4xf32>
    %32 = vector.shape_cast %31 : vector<4xf32> to vector<4x1xf32>
    %33 = math.log %32 : vector<4x1xf32>
    %34 = arith.addf %27, %33 : vector<4x1xf32>
    %cst_19 = arith.constant 0.000000e+00 : f32
    %35 = vector.broadcast %cst_19 : f32 to vector<4x128xf32>
    %36 = arith.select %23, %17, %35 : vector<4x128xi1>, vector<4x128xf32>
    %cst_20 = arith.constant dense<0.000000e+00> : vector<4xf32>
    %37 = vector.multi_reduction <add>, %36, %cst_20 [1] : vector<4x128xf32> to vector<4xf32>
    %38 = vector.shape_cast %37 : vector<4xf32> to vector<4x1xf32>
    %39 = arith.subf %34, %38 : vector<4x1xf32>
    %40 = vector.broadcast %27 : vector<4x1xf32> to vector<4x128xf32>
    %41 = arith.cmpf oeq, %25, %40 : vector<4x128xf32>
    %c128_i32 = arith.constant 128 : i32
    %42 = vector.broadcast %c128_i32 : i32 to vector<4x128xi32>
    %43 = arith.select %41, %18, %42 : vector<4x128xi1>, vector<4x128xi32>
    %cst_21 = arith.constant dense<2147483647> : vector<4xi32>
    %44 = vector.multi_reduction <minsi>, %43, %cst_21 [1] : vector<4x128xi32> to vector<4xi32>
    %45 = vector.shape_cast %44 : vector<4xi32> to vector<4x1xi32>
    %c0_i32_22 = arith.constant 0 : i32
    %46 = vector.broadcast %c0_i32_22 : i32 to vector<4x1xi32>
    %47 = arith.subi %45, %46 : vector<4x1xi32>
    %48 = arith.sitofp %47 : vector<4x1xi32> to vector<4x1xf32>
    %c50_i32 = arith.constant 50 : i32
    %49 = vector.broadcast %c50_i32 : i32 to vector<4x128xi32>
    %50 = arith.cmpi eq, %18, %49 : vector<4x128xi32>
    %51 = arith.extui %50 : vector<4x128xi1> to vector<4x128xi32>
    %52 = arith.sitofp %51 : vector<4x128xi32> to vector<4x128xf32>
    %53 = vector.broadcast %39 : vector<4x1xf32> to vector<4x128xf32>
    %54 = arith.mulf %53, %52 : vector<4x128xf32>
    %55 = arith.addf %15, %54 : vector<4x128xf32>
    %c55_i32 = arith.constant 55 : i32
    %56 = vector.broadcast %c55_i32 : i32 to vector<4x128xi32>
    %57 = arith.cmpi eq, %18, %56 : vector<4x128xi32>
    %58 = arith.extui %57 : vector<4x128xi1> to vector<4x128xi32>
    %59 = arith.sitofp %58 : vector<4x128xi32> to vector<4x128xf32>
    %60 = vector.broadcast %48 : vector<4x1xf32> to vector<4x128xf32>
    %61 = arith.mulf %60, %59 : vector<4x128xf32>
    %62 = arith.addf %55, %61 : vector<4x128xf32>
    %c10_i32_23 = arith.constant 10 : i32
    %63 = vector.broadcast %c10_i32_23 : i32 to vector<4x128xi32>
    %64 = arith.cmpi sge, %18, %63 : vector<4x128xi32>
    %c20_i32 = arith.constant 20 : i32
    %65 = vector.broadcast %c20_i32 : i32 to vector<4x128xi32>
    %66 = arith.cmpi slt, %18, %65 : vector<4x128xi32>
    %67 = arith.andi %64, %66 : vector<4x128xi1>
    %cst_24 = arith.constant -1.000000e+30 : f32
    %68 = vector.broadcast %cst_24 : f32 to vector<4x128xf32>
    %69 = arith.select %67, %15, %68 : vector<4x128xi1>, vector<4x128xf32>
    %cst_25 = arith.constant dense<0xFF800000> : vector<4xf32>
    %70 = vector.multi_reduction <maximumf>, %69, %cst_25 [1] : vector<4x128xf32> to vector<4xf32>
    %71 = vector.shape_cast %70 : vector<4xf32> to vector<4x1xf32>
    %72 = vector.broadcast %71 : vector<4x1xf32> to vector<4x128xf32>
    %73 = arith.subf %69, %72 : vector<4x128xf32>
    %74 = math.exp %73 : vector<4x128xf32>
    %cst_26 = arith.constant dense<0.000000e+00> : vector<4xf32>
    %75 = vector.multi_reduction <add>, %74, %cst_26 [1] : vector<4x128xf32> to vector<4xf32>
    %76 = vector.shape_cast %75 : vector<4xf32> to vector<4x1xf32>
    %77 = math.log %76 : vector<4x1xf32>
    %78 = arith.addf %71, %77 : vector<4x1xf32>
    %cst_27 = arith.constant 0.000000e+00 : f32
    %79 = vector.broadcast %cst_27 : f32 to vector<4x128xf32>
    %80 = arith.select %67, %17, %79 : vector<4x128xi1>, vector<4x128xf32>
    %cst_28 = arith.constant dense<0.000000e+00> : vector<4xf32>
    %81 = vector.multi_reduction <add>, %80, %cst_28 [1] : vector<4x128xf32> to vector<4xf32>
    %82 = vector.shape_cast %81 : vector<4xf32> to vector<4x1xf32>
    %83 = arith.subf %78, %82 : vector<4x1xf32>
    %84 = vector.broadcast %71 : vector<4x1xf32> to vector<4x128xf32>
    %85 = arith.cmpf oeq, %69, %84 : vector<4x128xf32>
    %c128_i32_29 = arith.constant 128 : i32
    %86 = vector.broadcast %c128_i32_29 : i32 to vector<4x128xi32>
    %87 = arith.select %85, %18, %86 : vector<4x128xi1>, vector<4x128xi32>
    %cst_30 = arith.constant dense<2147483647> : vector<4xi32>
    %88 = vector.multi_reduction <minsi>, %87, %cst_30 [1] : vector<4x128xi32> to vector<4xi32>
    %89 = vector.shape_cast %88 : vector<4xi32> to vector<4x1xi32>
    %c10_i32_31 = arith.constant 10 : i32
    %90 = vector.broadcast %c10_i32_31 : i32 to vector<4x1xi32>
    %91 = arith.subi %89, %90 : vector<4x1xi32>
    %92 = arith.sitofp %91 : vector<4x1xi32> to vector<4x1xf32>
    %c51_i32 = arith.constant 51 : i32
    %93 = vector.broadcast %c51_i32 : i32 to vector<4x128xi32>
    %94 = arith.cmpi eq, %18, %93 : vector<4x128xi32>
    %95 = arith.extui %94 : vector<4x128xi1> to vector<4x128xi32>
    %96 = arith.sitofp %95 : vector<4x128xi32> to vector<4x128xf32>
    %97 = vector.broadcast %83 : vector<4x1xf32> to vector<4x128xf32>
    %98 = arith.mulf %97, %96 : vector<4x128xf32>
    %99 = arith.addf %62, %98 : vector<4x128xf32>
    %c56_i32 = arith.constant 56 : i32
    %100 = vector.broadcast %c56_i32 : i32 to vector<4x128xi32>
    %101 = arith.cmpi eq, %18, %100 : vector<4x128xi32>
    %102 = arith.extui %101 : vector<4x128xi1> to vector<4x128xi32>
    %103 = arith.sitofp %102 : vector<4x128xi32> to vector<4x128xf32>
    %104 = vector.broadcast %92 : vector<4x1xf32> to vector<4x128xf32>
    %105 = arith.mulf %104, %103 : vector<4x128xf32>
    %106 = arith.addf %99, %105 : vector<4x128xf32>
    %c20_i32_32 = arith.constant 20 : i32
    %107 = vector.broadcast %c20_i32_32 : i32 to vector<4x128xi32>
    %108 = arith.cmpi sge, %18, %107 : vector<4x128xi32>
    %c30_i32 = arith.constant 30 : i32
    %109 = vector.broadcast %c30_i32 : i32 to vector<4x128xi32>
    %110 = arith.cmpi slt, %18, %109 : vector<4x128xi32>
    %111 = arith.andi %108, %110 : vector<4x128xi1>
    %cst_33 = arith.constant -1.000000e+30 : f32
    %112 = vector.broadcast %cst_33 : f32 to vector<4x128xf32>
    %113 = arith.select %111, %15, %112 : vector<4x128xi1>, vector<4x128xf32>
    %cst_34 = arith.constant dense<0xFF800000> : vector<4xf32>
    %114 = vector.multi_reduction <maximumf>, %113, %cst_34 [1] : vector<4x128xf32> to vector<4xf32>
    %115 = vector.shape_cast %114 : vector<4xf32> to vector<4x1xf32>
    %116 = vector.broadcast %115 : vector<4x1xf32> to vector<4x128xf32>
    %117 = arith.subf %113, %116 : vector<4x128xf32>
    %118 = math.exp %117 : vector<4x128xf32>
    %cst_35 = arith.constant dense<0.000000e+00> : vector<4xf32>
    %119 = vector.multi_reduction <add>, %118, %cst_35 [1] : vector<4x128xf32> to vector<4xf32>
    %120 = vector.shape_cast %119 : vector<4xf32> to vector<4x1xf32>
    %121 = math.log %120 : vector<4x1xf32>
    %122 = arith.addf %115, %121 : vector<4x1xf32>
    %cst_36 = arith.constant 0.000000e+00 : f32
    %123 = vector.broadcast %cst_36 : f32 to vector<4x128xf32>
    %124 = arith.select %111, %17, %123 : vector<4x128xi1>, vector<4x128xf32>
    %cst_37 = arith.constant dense<0.000000e+00> : vector<4xf32>
    %125 = vector.multi_reduction <add>, %124, %cst_37 [1] : vector<4x128xf32> to vector<4xf32>
    %126 = vector.shape_cast %125 : vector<4xf32> to vector<4x1xf32>
    %127 = arith.subf %122, %126 : vector<4x1xf32>
    %128 = vector.broadcast %115 : vector<4x1xf32> to vector<4x128xf32>
    %129 = arith.cmpf oeq, %113, %128 : vector<4x128xf32>
    %c128_i32_38 = arith.constant 128 : i32
    %130 = vector.broadcast %c128_i32_38 : i32 to vector<4x128xi32>
    %131 = arith.select %129, %18, %130 : vector<4x128xi1>, vector<4x128xi32>
    %cst_39 = arith.constant dense<2147483647> : vector<4xi32>
    %132 = vector.multi_reduction <minsi>, %131, %cst_39 [1] : vector<4x128xi32> to vector<4xi32>
    %133 = vector.shape_cast %132 : vector<4xi32> to vector<4x1xi32>
    %c20_i32_40 = arith.constant 20 : i32
    %134 = vector.broadcast %c20_i32_40 : i32 to vector<4x1xi32>
    %135 = arith.subi %133, %134 : vector<4x1xi32>
    %136 = arith.sitofp %135 : vector<4x1xi32> to vector<4x1xf32>
    %c52_i32 = arith.constant 52 : i32
    %137 = vector.broadcast %c52_i32 : i32 to vector<4x128xi32>
    %138 = arith.cmpi eq, %18, %137 : vector<4x128xi32>
    %139 = arith.extui %138 : vector<4x128xi1> to vector<4x128xi32>
    %140 = arith.sitofp %139 : vector<4x128xi32> to vector<4x128xf32>
    %141 = vector.broadcast %127 : vector<4x1xf32> to vector<4x128xf32>
    %142 = arith.mulf %141, %140 : vector<4x128xf32>
    %143 = arith.addf %106, %142 : vector<4x128xf32>
    %c57_i32 = arith.constant 57 : i32
    %144 = vector.broadcast %c57_i32 : i32 to vector<4x128xi32>
    %145 = arith.cmpi eq, %18, %144 : vector<4x128xi32>
    %146 = arith.extui %145 : vector<4x128xi1> to vector<4x128xi32>
    %147 = arith.sitofp %146 : vector<4x128xi32> to vector<4x128xf32>
    %148 = vector.broadcast %136 : vector<4x1xf32> to vector<4x128xf32>
    %149 = arith.mulf %148, %147 : vector<4x128xf32>
    %150 = arith.addf %143, %149 : vector<4x128xf32>
    %c30_i32_41 = arith.constant 30 : i32
    %151 = vector.broadcast %c30_i32_41 : i32 to vector<4x128xi32>
    %152 = arith.cmpi sge, %18, %151 : vector<4x128xi32>
    %c40_i32 = arith.constant 40 : i32
    %153 = vector.broadcast %c40_i32 : i32 to vector<4x128xi32>
    %154 = arith.cmpi slt, %18, %153 : vector<4x128xi32>
    %155 = arith.andi %152, %154 : vector<4x128xi1>
    %cst_42 = arith.constant -1.000000e+30 : f32
    %156 = vector.broadcast %cst_42 : f32 to vector<4x128xf32>
    %157 = arith.select %155, %15, %156 : vector<4x128xi1>, vector<4x128xf32>
    %cst_43 = arith.constant dense<0xFF800000> : vector<4xf32>
    %158 = vector.multi_reduction <maximumf>, %157, %cst_43 [1] : vector<4x128xf32> to vector<4xf32>
    %159 = vector.shape_cast %158 : vector<4xf32> to vector<4x1xf32>
    %160 = vector.broadcast %159 : vector<4x1xf32> to vector<4x128xf32>
    %161 = arith.subf %157, %160 : vector<4x128xf32>
    %162 = math.exp %161 : vector<4x128xf32>
    %cst_44 = arith.constant dense<0.000000e+00> : vector<4xf32>
    %163 = vector.multi_reduction <add>, %162, %cst_44 [1] : vector<4x128xf32> to vector<4xf32>
    %164 = vector.shape_cast %163 : vector<4xf32> to vector<4x1xf32>
    %165 = math.log %164 : vector<4x1xf32>
    %166 = arith.addf %159, %165 : vector<4x1xf32>
    %cst_45 = arith.constant 0.000000e+00 : f32
    %167 = vector.broadcast %cst_45 : f32 to vector<4x128xf32>
    %168 = arith.select %155, %17, %167 : vector<4x128xi1>, vector<4x128xf32>
    %cst_46 = arith.constant dense<0.000000e+00> : vector<4xf32>
    %169 = vector.multi_reduction <add>, %168, %cst_46 [1] : vector<4x128xf32> to vector<4xf32>
    %170 = vector.shape_cast %169 : vector<4xf32> to vector<4x1xf32>
    %171 = arith.subf %166, %170 : vector<4x1xf32>
    %172 = vector.broadcast %159 : vector<4x1xf32> to vector<4x128xf32>
    %173 = arith.cmpf oeq, %157, %172 : vector<4x128xf32>
    %c128_i32_47 = arith.constant 128 : i32
    %174 = vector.broadcast %c128_i32_47 : i32 to vector<4x128xi32>
    %175 = arith.select %173, %18, %174 : vector<4x128xi1>, vector<4x128xi32>
    %cst_48 = arith.constant dense<2147483647> : vector<4xi32>
    %176 = vector.multi_reduction <minsi>, %175, %cst_48 [1] : vector<4x128xi32> to vector<4xi32>
    %177 = vector.shape_cast %176 : vector<4xi32> to vector<4x1xi32>
    %c30_i32_49 = arith.constant 30 : i32
    %178 = vector.broadcast %c30_i32_49 : i32 to vector<4x1xi32>
    %179 = arith.subi %177, %178 : vector<4x1xi32>
    %180 = arith.sitofp %179 : vector<4x1xi32> to vector<4x1xf32>
    %c53_i32 = arith.constant 53 : i32
    %181 = vector.broadcast %c53_i32 : i32 to vector<4x128xi32>
    %182 = arith.cmpi eq, %18, %181 : vector<4x128xi32>
    %183 = arith.extui %182 : vector<4x128xi1> to vector<4x128xi32>
    %184 = arith.sitofp %183 : vector<4x128xi32> to vector<4x128xf32>
    %185 = vector.broadcast %171 : vector<4x1xf32> to vector<4x128xf32>
    %186 = arith.mulf %185, %184 : vector<4x128xf32>
    %187 = arith.addf %150, %186 : vector<4x128xf32>
    %c58_i32 = arith.constant 58 : i32
    %188 = vector.broadcast %c58_i32 : i32 to vector<4x128xi32>
    %189 = arith.cmpi eq, %18, %188 : vector<4x128xi32>
    %190 = arith.extui %189 : vector<4x128xi1> to vector<4x128xi32>
    %191 = arith.sitofp %190 : vector<4x128xi32> to vector<4x128xf32>
    %192 = vector.broadcast %180 : vector<4x1xf32> to vector<4x128xf32>
    %193 = arith.mulf %192, %191 : vector<4x128xf32>
    %194 = arith.addf %187, %193 : vector<4x128xf32>
    %c40_i32_50 = arith.constant 40 : i32
    %195 = vector.broadcast %c40_i32_50 : i32 to vector<4x128xi32>
    %196 = arith.cmpi sge, %18, %195 : vector<4x128xi32>
    %c50_i32_51 = arith.constant 50 : i32
    %197 = vector.broadcast %c50_i32_51 : i32 to vector<4x128xi32>
    %198 = arith.cmpi slt, %18, %197 : vector<4x128xi32>
    %199 = arith.andi %196, %198 : vector<4x128xi1>
    %cst_52 = arith.constant -1.000000e+30 : f32
    %200 = vector.broadcast %cst_52 : f32 to vector<4x128xf32>
    %201 = arith.select %199, %15, %200 : vector<4x128xi1>, vector<4x128xf32>
    %cst_53 = arith.constant dense<0xFF800000> : vector<4xf32>
    %202 = vector.multi_reduction <maximumf>, %201, %cst_53 [1] : vector<4x128xf32> to vector<4xf32>
    %203 = vector.shape_cast %202 : vector<4xf32> to vector<4x1xf32>
    %204 = vector.broadcast %203 : vector<4x1xf32> to vector<4x128xf32>
    %205 = arith.subf %201, %204 : vector<4x128xf32>
    %206 = math.exp %205 : vector<4x128xf32>
    %cst_54 = arith.constant dense<0.000000e+00> : vector<4xf32>
    %207 = vector.multi_reduction <add>, %206, %cst_54 [1] : vector<4x128xf32> to vector<4xf32>
    %208 = vector.shape_cast %207 : vector<4xf32> to vector<4x1xf32>
    %209 = math.log %208 : vector<4x1xf32>
    %210 = arith.addf %203, %209 : vector<4x1xf32>
    %cst_55 = arith.constant 0.000000e+00 : f32
    %211 = vector.broadcast %cst_55 : f32 to vector<4x128xf32>
    %212 = arith.select %199, %17, %211 : vector<4x128xi1>, vector<4x128xf32>
    %cst_56 = arith.constant dense<0.000000e+00> : vector<4xf32>
    %213 = vector.multi_reduction <add>, %212, %cst_56 [1] : vector<4x128xf32> to vector<4xf32>
    %214 = vector.shape_cast %213 : vector<4xf32> to vector<4x1xf32>
    %215 = arith.subf %210, %214 : vector<4x1xf32>
    %216 = vector.broadcast %203 : vector<4x1xf32> to vector<4x128xf32>
    %217 = arith.cmpf oeq, %201, %216 : vector<4x128xf32>
    %c128_i32_57 = arith.constant 128 : i32
    %218 = vector.broadcast %c128_i32_57 : i32 to vector<4x128xi32>
    %219 = arith.select %217, %18, %218 : vector<4x128xi1>, vector<4x128xi32>
    %cst_58 = arith.constant dense<2147483647> : vector<4xi32>
    %220 = vector.multi_reduction <minsi>, %219, %cst_58 [1] : vector<4x128xi32> to vector<4xi32>
    %221 = vector.shape_cast %220 : vector<4xi32> to vector<4x1xi32>
    %c40_i32_59 = arith.constant 40 : i32
    %222 = vector.broadcast %c40_i32_59 : i32 to vector<4x1xi32>
    %223 = arith.subi %221, %222 : vector<4x1xi32>
    %224 = arith.sitofp %223 : vector<4x1xi32> to vector<4x1xf32>
    %c54_i32 = arith.constant 54 : i32
    %225 = vector.broadcast %c54_i32 : i32 to vector<4x128xi32>
    %226 = arith.cmpi eq, %18, %225 : vector<4x128xi32>
    %227 = arith.extui %226 : vector<4x128xi1> to vector<4x128xi32>
    %228 = arith.sitofp %227 : vector<4x128xi32> to vector<4x128xf32>
    %229 = vector.broadcast %215 : vector<4x1xf32> to vector<4x128xf32>
    %230 = arith.mulf %229, %228 : vector<4x128xf32>
    %231 = arith.addf %194, %230 : vector<4x128xf32>
    %c59_i32 = arith.constant 59 : i32
    %232 = vector.broadcast %c59_i32 : i32 to vector<4x128xi32>
    %233 = arith.cmpi eq, %18, %232 : vector<4x128xi32>
    %234 = arith.extui %233 : vector<4x128xi1> to vector<4x128xi32>
    %235 = arith.sitofp %234 : vector<4x128xi32> to vector<4x128xf32>
    %236 = vector.broadcast %224 : vector<4x1xf32> to vector<4x128xf32>
    %237 = arith.mulf %236, %235 : vector<4x128xf32>
    %238 = arith.addf %231, %237 : vector<4x128xf32>
    %c0_60 = arith.constant 0 : index
    %c0_61 = arith.constant 0 : index
    %239 = vector.load %arg6[%c0_60, %c0_61] : memref<4x128xf32, #tpu.memory_space<vmem>>, vector<4x128xf32>
    tpu.vector_store %arg6[%c0_60, %c0_61], %238 {strides = array<i32>} : memref<4x128xf32, #tpu.memory_space<vmem>>, vector<4x128xf32>,
    return
  }
}

</mosaic_0001>

<bundles_post_ra>
// kernel: forward.1
= control target key start
LH: loop header
LB: loop body
LE: loop exit
PB: predicated region body
PF: predicated region fallthrough
CT: control target
= control target key end

     0   :  { %11 = vsyncpa [#allocation3], 0  ;;  %s969_s21 = smov [#allocation2]   ;;  %s1247_s0 = inlined_call_operand.vmem [shape: f32[4,4,256], index: 0, kind: input, shape index: {}]   ;;  %s1248_s1 = inlined_call_operand.vmem [shape: f32[4,512], index: 1, kind: input, shape index: {}]   ;;  %s1249_s2 = inlined_call_operand.vmem [shape: f32[1,512], index: 2, kind: input, shape index: {}]   ;;  %s1250_s3 = inlined_call_operand.hbm [shape: f32[512,128], index: 3, kind: input, shape index: {}]   ;;  %s1251_s4 = inlined_call_operand.vmem [shape: f32[1,128], index: 4, kind: input, shape index: {}]   ;;  %s1252_s5 = inlined_call_operand.vmem [shape: f32[4,128], index: 5, kind: input, shape index: {}]   ;;  %s1253_s6 = inlined_call_operand.vmem [shape: f32[4,128], index: 6, kind: output, shape index: {}]  }
   0x1   :  { %s23_s22 = sshll.u32 %s969_s21, 4  ;;  %s945_s25 = scalar_lea.hbm %s1250_s3, 8192  ;;  %s24_s22 = int_to_ptr.vmem [resolvable:$true] %s23_s22 }
   0x2   :  { %p946_p0 = scmp.ne.s32.totalorder %s1250_s3, %s945_s25  ;;  %p949_p1 = scmp.lt.u32.totalorder %s945_s25, %s1250_s3 }
   0x4   :  { %p951_p2 = pnand %p949_p1, %p946_p0 }
   0x6   :  { %954 = shalt.err (!%p951_p2)
}
   0x7   :  { %s955_s30 = scalar_lea.vmem %s24_s22, 8192  ;;  %p960_p4 = scmp.lt.s32.totalorder %s24_s22, %s24_s22 }
   0x8   :  { %p956_p3 = scmp.ne.s32.totalorder %s24_s22, %s955_s30  ;;  %p961_p5 = scmp.lt.s32.totalorder %s955_s30, %s955_s30 }
   0xa   :  { %p962_p6 = por %p961_p5, %p960_p4 }
   0xc   :  { %p963_p7 = pnand %p962_p6, %p956_p3 }
   0xe   :  { %966 = shalt.err (!%p963_p7)
}
   0xf   :  { %s970_s7 = smov 128   ;;  %s971_s8 = smov 8  }
  0x10   :  { %29 = dma.hbm_to_vmem [thread:$0]  %s1250_s3, 8192, %s24_s22, [#allocation3], %s970_s7, %s970_s7, %s971_s8  }
  0x11   :  { %967 = dma.done.wait [#allocation3], 8192  }
  0x12   :  { %968 = vsyncadd [#allocation3], 4294959104  ;;  %vm53_vm0 = vcmask 1043456   ;;  %v37_v0 = vld [vmem:[%s1247_s0] sm:$0xff]  ;;  %v39_v1 = vld [vmem:[%s1247_s0 + $0x10] sm:$0xff]  ;;  %v972_v24 = vmov 0.0   ;;  %v83_v31 = vlaneseq }
  0x13   :  { %v38_v2 = vld [vmem:[%s1247_s0 + $0x8] sm:$0xff]  ;;  %v45_v3 = vcombine.high %v37_v0, %v37_v0  ;;  %v54_v4 = vsel %vm53_vm0, %v37_v0, 0.0  ;;  %v47_v5 = vcombine.high %v39_v1, %v39_v1  ;;  %v64_v6 = vsel %vm53_vm0, %v39_v1, 0.0  ;;  %v40_v7 = vld [vmem:[%s1247_s0 + $0x18] sm:$0xff]  ;;  %v79_v20 = vld [vmem:[%s1248_s1] sm:$0xff]  ;;  %210 = vmatprep.mubr.f32.mxu0 %v972_v24  ;;  %281 = vmatprep.mubr.f32.mxu1 %v972_v24 }
  0x14   :  { %v46_v8 = vcombine.high %v38_v2, %v38_v2  ;;  %v48_v9 = vcombine.high %v40_v7, %v40_v7  ;;  %v59_v12 = vsel %vm53_vm0, %v38_v2, 0.0  ;;  %v69_v13 = vsel %vm53_vm0, %v40_v7, 0.0  ;;  %v80_v21 = vld [vmem:[%s1248_s1 + $0x8] sm:$0xff]  ;;  %v308_v25 = vld [vmem:[#allocation2 + $0x80] sm:$0xff]  ;;  %v310_v47 = vld [vmem:[#allocation2 + $0x90] sm:$0xff] }
  0x15   :  { %v55_v10 = vsel %vm53_vm0, %v45_v3, 0.0  ;;  %v65_v11 = vsel %vm53_vm0, %v47_v5, 0.0  ;;  %v133_v22 = vcombine.high %v79_v20, %v79_v20  ;;  %v134_v23 = vcombine.high %v80_v21, %v80_v21  ;;  %v309_v26 = vld [vmem:[#allocation2 + $0x88] sm:$0xff]  ;;  %v340_v27 = vld [vmem:[#allocation2 + $0x180] sm:$0xff]  ;;  %v311_v51 = vld [vmem:[#allocation2 + $0x98] sm:$0xff] }
  0x16   :  { %v56_v14 = vadd.f32 %v55_v10, %v54_v4  ;;  %v66_v15 = vadd.f32 %v65_v11, %v64_v6  ;;  %v60_v16 = vsel %vm53_vm0, %v46_v8, 0.0  ;;  %v70_v17 = vsel %vm53_vm0, %v48_v9, 0.0  ;;  %v341_v29 = vld [vmem:[#allocation2 + $0x188] sm:$0xff]  ;;  %v292_v43 = vld [vmem:[#allocation2] sm:$0xff]  ;;  %v342_v52 = vld [vmem:[#allocation2 + $0x190] sm:$0xff] }
  0x17   :  { %v61_v18 = vadd.f32 %v60_v16, %v59_v12  ;;  %v71_v19 = vadd.f32 %v70_v17, %v69_v13  ;;  %760 = vmatprep.subr.msk.mxu0 %vm53_vm0, %v133_v22  ;;  %763 = vmatprep.subr.msk.mxu1 %vm53_vm0, %v134_v23  ;;  %v851_v28 = vpack.c.bf16 %v309_v26, %v308_v25  ;;  %v1052_v32 = vshrl.u32 %v83_v31, 7  ;;  %v293_v44 = vld [vmem:[#allocation2 + $0x8] sm:$0xff]  ;;  %v324_v45 = vld [vmem:[#allocation2 + $0x100] sm:$0xff]  ;;  %v343_v53 = vld [vmem:[#allocation2 + $0x198] sm:$0xff] }
  0x18   :  { %57 = vadd.xlane.f32.xlu0 %v56_v14  ;;  %67 = vadd.xlane.f32.xlu1 %v66_v15  ;;  %v883_v30 = vpack.c.bf16 %v341_v29, %v340_v27  ;;  %v1054_v33 = vand.u32 127, %v83_v31  ;;  %vm125_vm1 = vcmask 1041409   ;;  %v325_v46 = vld [vmem:[#allocation2 + $0x108] sm:$0xff]  ;;  %vm127_vm2 = vcmask 1042434   ;;  %v294_v58 = vld [vmem:[#allocation2 + $0x10] sm:$0xff]  ;;  %v295_v59 = vld [vmem:[#allocation2 + $0x18] sm:$0xff] }
  0x19   :  { %761 = vmatpush1.msk.msra.mxu0 %vm53_vm0, %v79_v20  ;;  %764 = vmatpush1.msk.msra.mxu1 %vm53_vm0, %v80_v21  ;;  %vm129_vm3 = vcmask 1043459   ;;  %vm135_vm4 = vcmask 31744   ;;  %v853_v56 = vpack.c.bf16 %v293_v44, %v292_v43  ;;  %v885_v57 = vpack.c.bf16 %v325_v46, %v324_v45  ;;  %v326_v63 = vld [vmem:[#allocation2 + $0x110] sm:$0xff]  ;;  %v327_v0 = vld [vmem:[#allocation2 + $0x118] sm:$0xff]  ;;  %v312_v1 = vld [vmem:[#allocation2 + $0xa0] sm:$0xff] }
  0x1a   :  { %852 = vmatprep.subr.bf16.mxu0 %v851_v28  ;;  %884 = vmatprep.subr.bf16.mxu1 %v883_v30  ;;  %v111_v36 = vsub.s32 %v1054_v33, %v1052_v32  ;;  %v855_v61 = vpack.c.bf16 %v311_v51, %v310_v47  ;;  %v887_v62 = vpack.c.bf16 %v343_v53, %v342_v52  ;;  %v313_v3 = vld [vmem:[#allocation2 + $0xa8] sm:$0xff]  ;;  %v344_v4 = vld [vmem:[#allocation2 + $0x1a0] sm:$0xff]  ;;  %v314_v14 = vld [vmem:[#allocation2 + $0xb0] sm:$0xff]  ;;  %vm554_vm5 = vcmp.ge.s32.totalorder %v1054_v33, 10 }
  0x1b   :  { %v345_v5 = vld [vmem:[#allocation2 + $0x1a8] sm:$0xff]  ;;  %v857_v6 = vpack.c.bf16 %v295_v59, %v294_v58  ;;  %v889_v7 = vpack.c.bf16 %v327_v0, %v326_v63  ;;  %v296_v8 = vld [vmem:[#allocation2 + $0x20] sm:$0xff]  ;;  %v859_v10 = vpack.c.bf16 %v313_v3, %v312_v1  ;;  %v315_v15 = vld [vmem:[#allocation2 + $0xb8] sm:$0xff]  ;;  %vm555_vm6 = vcmp.lt.s32.totalorder %v1054_v33, 20 }
  0x1c   :  { %62 = vadd.xlane.f32.xlu0 %v61_v18  ;;  %72 = vadd.xlane.f32.xlu1 %v71_v19  ;;  %v297_v9 = vld [vmem:[#allocation2 + $0x28] sm:$0xff]  ;;  %v891_v11 = vpack.c.bf16 %v345_v5, %v344_v4  ;;  %v328_v12 = vld [vmem:[#allocation2 + $0x120] sm:$0xff]  ;;  %v346_v16 = vld [vmem:[#allocation2 + $0x1b0] sm:$0xff]  ;;  %v863_v22 = vpack.c.bf16 %v315_v15, %v314_v14  ;;  %v85_v15 = vsub.s32 0, %v1052_v32  ;;  %vm654_vm7 = vcmp.ge.s32.totalorder %v1054_v33, 30 }
  0x1d   :  { %v329_v13 = vld [vmem:[#allocation2 + $0x128] sm:$0xff]  ;;  %v347_v17 = vld [vmem:[#allocation2 + $0x1b8] sm:$0xff]  ;;  %v861_v18 = vpack.c.bf16 %v297_v9, %v296_v8  ;;  %v298_v20 = vld [vmem:[#allocation2 + $0x30] sm:$0xff]  ;;  %vm655_vm8 = vcmp.lt.s32.totalorder %v1054_v33, 40  ;;  %vm604_vm9 = vcmp.ge.s32.totalorder %v1054_v33, 20  ;;  %vm605_vm10 = vcmp.lt.s32.totalorder %v1054_v33, 30 }
  0x1e   :  { %v893_v19 = vpack.c.bf16 %v329_v13, %v328_v12  ;;  %v299_v21 = vld [vmem:[#allocation2 + $0x38] sm:$0xff]  ;;  %v895_v23 = vpack.c.bf16 %v347_v17, %v346_v16  ;;  %v330_v25 = vld [vmem:[#allocation2 + $0x130] sm:$0xff]  ;;  %v316_v27 = vld [vmem:[#allocation2 + $0xc0] sm:$0xff]  ;;  %v93_v16 = vsub.s32 2, %v1052_v32  ;;  %vm506_vm12 = vcmp.lt.s32.totalorder %v1054_v33, 10 }
  0x1f   :  { %v331_v26 = vld [vmem:[#allocation2 + $0x138] sm:$0xff]  ;;  %v317_v28 = vld [vmem:[#allocation2 + $0xc8] sm:$0xff]  ;;  %v348_v29 = vld [vmem:[#allocation2 + $0x1c0] sm:$0xff]  ;;  %v865_v31 = vpack.c.bf16 %v299_v21, %v298_v20  ;;  %vm704_vm15 = vcmp.ge.s32.totalorder %v1054_v33, 40 }
  0x20   :  { %v349_v30 = vld [vmem:[#allocation2 + $0x1c8] sm:$0xff]  ;;  %v350_v43 = vld [vmem:[#allocation2 + $0x1d0] sm:$0xff]  ;;  %v351_v44 = vld [vmem:[#allocation2 + $0x1d8] sm:$0xff] }
  0x21   :  { %v302_v47 = vld [vmem:[#allocation2 + $0x50] sm:$0xff]  ;;  %v335_v52 = vld [vmem:[#allocation2 + $0x158] sm:$0xff]  ;;  %v320_v53 = vld [vmem:[#allocation2 + $0xe0] sm:$0xff] }
  0x22   :  { %v334_v51 = vld [vmem:[#allocation2 + $0x150] sm:$0xff]  ;;  %v336_v63 = vld [vmem:[#allocation2 + $0x160] sm:$0xff]  ;;  %v337_v1 = vld [vmem:[#allocation2 + $0x168] sm:$0xff] }
  0x23   :  { %v905_v58 = vpack.c.bf16 %v335_v52, %v334_v51  ;;  %v322_v3 = vld [vmem:[#allocation2 + $0xf0] sm:$0xff]  ;;  %v323_v4 = vld [vmem:[#allocation2 + $0xf8] sm:$0xff]  ;;  %v81_v17 = vld [vmem:[%s1249_s2] sm:$0xf] }
  0x24   :  { %v354_v5 = vld [vmem:[#allocation2 + $0x1f0] sm:$0xff]  ;;  %v307_v9 = vld [vmem:[#allocation2 + $0x78] sm:$0xff]  ;;  %v86_v20 = vrot.slane %v81_v17, %v85_v15  ;;  %v94_v21 = vrot.slane %v81_v17, %v93_v16  ;;  %vm1076_vm11 = vmand %vm554_vm5, %vm555_vm6 }
  0x25   :  { %v306_v8 = vld [vmem:[#allocation2 + $0x70] sm:$0xff]  ;;  %v339_v13 = vld [vmem:[#allocation2 + $0x178] sm:$0xff]  ;;  %vm1086_vm13 = vmand %vm654_vm7, %vm655_vm8 }
  0x26   :  { %v338_v12 = vld [vmem:[#allocation2 + $0x170] sm:$0xff]  ;;  %vm1090_vm14 = vmand %vm604_vm9, %vm605_vm10 }
  0x27   :  { %v913_v14 = vpack.c.bf16 %v339_v13, %v338_v12 }
  0xa5   :  { %v58_v34 = vpop.xlane.xlu0 %57  ;;  %v68_v35 = vpop.xlane.xlu1 %67 }
  0xa6   :  { %v75_v37 = vmul.f32 0.00390625, %v58_v34  ;;  %v77_v38 = vmul.f32 0.00390625, %v68_v35  ;;  %v897_v34 = vpack.c.bf16 %v331_v26, %v330_v25  ;;  %v300_v35 = vld [vmem:[#allocation2 + $0x40] sm:$0xff] }
  0xa8   :  { %v112_v48 = vrot.slane %v75_v37, %v111_v36  ;;  %v120_v54 = vrot.slane %v77_v38, %v111_v36  ;;  %v867_v37 = vpack.c.bf16 %v317_v28, %v316_v27  ;;  %v899_v38 = vpack.c.bf16 %v349_v30, %v348_v29 }
  0xa9   :  { %v63_v39 = vpop.xlane.xlu0 %62  ;;  %v73_v40 = vpop.xlane.xlu1 %72 }
  0xaa   :  { %v76_v41 = vmul.f32 0.00390625, %v63_v39  ;;  %v78_v42 = vmul.f32 0.00390625, %v73_v40  ;;  %v332_v39 = vld [vmem:[#allocation2 + $0x140] sm:$0xff]  ;;  %v333_v40 = vld [vmem:[#allocation2 + $0x148] sm:$0xff] }
  0xab   :  { %v901_v46 = vpack.c.bf16 %v333_v40, %v332_v39  ;;  %v766_v40 = vld [vmem:[%s1251_s4] ss:$0 sm:$0xff] }
  0xac   :  { %v116_v49 = vrot.slane %v76_v41, %v111_v36  ;;  %v124_v50 = vrot.slane %v78_v42, %v111_v36  ;;  %v301_v36 = vld [vmem:[#allocation2 + $0x48] sm:$0xff]  ;;  %v318_v41 = vld [vmem:[#allocation2 + $0xd0] sm:$0xff]  ;;  %v319_v42 = vld [vmem:[#allocation2 + $0xd8] sm:$0xff] }
  0xad   :  { %v869_v45 = vpack.c.bf16 %v301_v36, %v300_v35 }
  0xae   :  { %v126_v55 = vsel %vm125_vm1, %v116_v49, %v112_v48  ;;  %v303_v48 = vld [vmem:[#allocation2 + $0x58] sm:$0xff]  ;;  %v871_v49 = vpack.c.bf16 %v319_v42, %v318_v41  ;;  %vm705_vm1 = vcmp.lt.s32.totalorder %v1054_v33, 50 }
  0xaf   :  { %v128_v60 = vsel %vm127_vm2, %v120_v54, %v126_v55  ;;  %v321_v54 = vld [vmem:[#allocation2 + $0xe8] sm:$0xff]  ;;  %v352_v55 = vld [vmem:[#allocation2 + $0x1e0] sm:$0xff]  ;;  %vm1116_vm2 = vmand %vm704_vm15, %vm705_vm1  ;;  %vm644_vm1 = vcmp.eq.s32.totalorder %v1054_v33, 52 }
  0xb0   :  { %v130_v2 = vsel %vm129_vm3, %v124_v50, %v128_v60  ;;  %v903_v50 = vpack.c.bf16 %v351_v44, %v350_v43  ;;  %v875_v59 = vpack.c.bf16 %v321_v54, %v320_v53 }
  0xb1   :  { %762 = vmatmul.mubr.msk.f32.vlgmr.msra.gmra.mrb[0].mxu0 %vm135_vm4, %v130_v2  ;;  %765 = vmatmul.mubr.msk.f32.vlgmr.msra.gmra.mrb[0].mxu1 %vm135_vm4, %v130_v2  ;;  %v909_v2 = vpack.c.bf16 %v337_v1, %v336_v63 }
  0xb2   :  { %854 = vmatpush3.bf16.msra.mxu0 %v853_v56  ;;  %886 = vmatpush3.bf16.msra.mxu1 %v885_v57  ;;  %v353_v56 = vld [vmem:[#allocation2 + $0x1e8] sm:$0xff]  ;;  %v873_v57 = vpack.c.bf16 %v303_v48, %v302_v47  ;;  %v503_v47 = vld [vmem:[%s1252_s5] sm:$0xf] }
  0xb3   :  { %856 = vmatprep.subr.bf16.mxu0 %v855_v61  ;;  %888 = vmatprep.subr.bf16.mxu1 %v887_v62  ;;  %v907_v60 = vpack.c.bf16 %v353_v56, %v352_v55  ;;  %v304_v61 = vld [vmem:[#allocation2 + $0x60] sm:$0xff]  ;;  %v305_v62 = vld [vmem:[#allocation2 + $0x68] sm:$0xff] }
  0xb4   :  { %v877_v0 = vpack.c.bf16 %v305_v62, %v304_v61 }
  0xb6   :  { %858 = vmatpush3.bf16.msra.mxu0 %v857_v6  ;;  %890 = vmatpush3.bf16.msra.mxu1 %v889_v7  ;;  %v879_v6 = vpack.c.bf16 %v323_v4, %v322_v3  ;;  %v355_v7 = vld [vmem:[#allocation2 + $0x1f8] sm:$0xff] }
  0xb7   :  { %860 = vmatprep.subr.bf16.mxu0 %v859_v10  ;;  %892 = vmatprep.subr.bf16.mxu1 %v891_v11  ;;  %v911_v10 = vpack.c.bf16 %v355_v7, %v354_v5  ;;  %v881_v11 = vpack.c.bf16 %v307_v9, %v306_v8 }
  0xba   :  { %862 = vmatpush3.bf16.msra.mxu0 %v861_v18  ;;  %894 = vmatpush3.bf16.msra.mxu1 %v893_v19  ;;  %v89_v18 = vsub.s32 1, %v1052_v32  ;;  %v97_v19 = vsub.s32 3, %v1052_v32 }
  0xbb   :  { %864 = vmatprep.subr.bf16.mxu0 %v863_v22  ;;  %896 = vmatprep.subr.bf16.mxu1 %v895_v23 }
  0xbc   :  { %v90_v22 = vrot.slane %v81_v17, %v89_v18  ;;  %v98_v23 = vrot.slane %v81_v17, %v97_v19 }
  0xbe   :  { %866 = vmatpush3.bf16.msra.mxu0 %v865_v31  ;;  %898 = vmatpush3.bf16.msra.mxu1 %v897_v34 }
  0xbf   :  { %868 = vmatprep.subr.bf16.mxu0 %v867_v37  ;;  %900 = vmatprep.subr.bf16.mxu1 %v899_v38 }
  0xc2   :  { %870 = vmatpush3.bf16.msra.mxu0 %v869_v45  ;;  %902 = vmatpush3.bf16.msra.mxu1 %v901_v46 }
  0xc3   :  { %872 = vmatprep.subr.bf16.mxu0 %v871_v49  ;;  %904 = vmatprep.subr.bf16.mxu1 %v903_v50 }
  0xc6   :  { %874 = vmatpush3.bf16.msra.mxu0 %v873_v57  ;;  %906 = vmatpush3.bf16.msra.mxu1 %v905_v58 }
  0xc7   :  { %876 = vmatprep.subr.bf16.mxu0 %v875_v59  ;;  %908 = vmatprep.subr.bf16.mxu1 %v907_v60 }
  0xca   :  { %878 = vmatpush3.bf16.msra.mxu0 %v877_v0  ;;  %910 = vmatpush3.bf16.msra.mxu1 %v909_v2 }
  0xcb   :  { %880 = vmatprep.subr.bf16.mxu0 %v879_v6  ;;  %912 = vmatprep.subr.bf16.mxu1 %v911_v10 }
  0xce   :  { %882 = vmatpush3.bf16.msra.mxu0 %v881_v11  ;;  %914 = vmatpush3.bf16.msra.mxu1 %v913_v14 }
 0x184   :  { %v212_v25 = vpop.f32.mrb[0].mxu0  ;;  %v283_v26 = vpop.f32.mrb[0].mxu1 }
 0x185   :  { %v213_v27 = vadd.f32 %v212_v25, %v86_v20  ;;  %v284_v28 = vadd.f32 %v283_v26, %v94_v21  ;;  %v214_v29 = vpop.f32.mrb[1].mxu0  ;;  %v285_v30 = vpop.f32.mrb[1].mxu1 }
 0x186   :  { %v215_v31 = vadd.f32 %v214_v29, %v90_v22  ;;  %v286_v34 = vadd.f32 %v285_v30, %v98_v23 }
 0x187   :  { %v288_v37 = vmax.f32 %v213_v27, 0.0  ;;  %v290_v38 = vmax.f32 %v284_v28, 0.0 }
 0x188   :  { %v289_v35 = vmax.f32 %v215_v31, 0.0  ;;  %v291_v36 = vmax.f32 %v286_v34, 0.0 }
 0x18a   :  { %427 = vmatprep.mubr.f32.mxu0 %v289_v35  ;;  %497 = vmatprep.mubr.f32.mxu1 %v291_v36 }
 0x18b   :  { %428 = vmatmul.mubr.f32.vlgmr.msra.gmra.mrb[2].mxu0 %v288_v37  ;;  %498 = vmatmul.mubr.f32.vlgmr.msra.gmra.mrb[2].mxu1 %v290_v38 }
 0x25e   :  { %v813_v32 = vpop.f32.mrb[2].mxu0  ;;  %v848_v39 = vpop.f32.mrb[2].mxu1 }
 0x25f   :  { %v814_v41 = vpop.f32.mrb[3].mxu0  ;;  %v849_v42 = vpop.f32.mrb[3].mxu1 }
 0x260   :  { %v815_v43 = vadd.f32 %v814_v41, %v813_v32  ;;  %v850_v44 = vadd.f32 %v849_v42, %v848_v39 }
 0x262   :  { %v430_v45 = vadd.f32 %v815_v43, %v766_v40 }
 0x264   :  { %v1084_v48 = vadd.f32 %v850_v44, %v430_v45 }
 0x266   :  { %v557_v51 = vsel %vm1076_vm11, %v1084_v48, -1e+30  ;;  %v508_v52 = vsel %vm506_vm12, %v1084_v48, -1e+30  ;;  %v1103_v53 = vmul.f32 %v503_v47, %v1084_v48  ;;  %v657_v56 = vsel %vm1086_vm13, %v1084_v48, -1e+30 }
 0x267   :  { %v558_v54 = vsel %vm53_vm0, %v557_v51, -inf  ;;  %v509_v55 = vsel %vm53_vm0, %v508_v52, -inf  ;;  %v607_v57 = vsel %vm1090_vm14, %v1084_v48, -1e+30  ;;  %v658_v63 = vsel %vm53_vm0, %v657_v56, -inf }
 0x268   :  { %559 = vmax.xlane.f32.xlu1 %v558_v54  ;;  %510 = vmax.xlane.f32.xlu0 %v509_v55  ;;  %v570_v58 = vsel %vm1076_vm11, %v1103_v53, 0.0  ;;  %v620_v60 = vsel %vm1090_vm14, %v1103_v53, 0.0  ;;  %v670_v61 = vsel %vm1086_vm13, %v1103_v53, 0.0  ;;  %v720_v62 = vsel %vm1116_vm2, %v1103_v53, 0.0 }
 0x269   :  { %v608_v0 = vsel %vm53_vm0, %v607_v57, -inf  ;;  %v707_v1 = vsel %vm1116_vm2, %v1084_v48, -1e+30  ;;  %v521_v47 = vsel %vm506_vm12, %v1103_v53, 0.0  ;;  %v671_v46 = vsel %vm53_vm0, %v670_v61, 0.0 }
 0x26a   :  { %v708_v2 = vsel %vm53_vm0, %v707_v1, -inf  ;;  %v721_v50 = vsel %vm53_vm0, %v720_v62, 0.0  ;;  %vm544_vm11 = vcmp.eq.s32.totalorder %v1054_v33, 50  ;;  %vm594_vm13 = vcmp.eq.s32.totalorder %v1054_v33, 51 }
 0x26b   :  { %vm599_vm14 = vcmp.eq.s32.totalorder %v1054_v33, 56  ;;  %vm649_vm2 = vcmp.eq.s32.totalorder %v1054_v33, 57 }
 0x26c   :  { %659 = vmax.xlane.f32.xlu1 %v658_v63  ;;  %609 = vmax.xlane.f32.xlu0 %v608_v0 }
 0x270   :  { %709 = vmax.xlane.f32.xlu0 %v708_v2 }
 0x2f5   :  { %v1135_v3 = vpop.xlane.xlu1 %559  ;;  %v1137_v4 = vpop.xlane.xlu0 %510 }
 0x2f6   :  { %v561_v5 = vsub.f32 %v557_v51, %v1135_v3  ;;  %vm575_vm3 = vcmp.eq.f32.partialorder %v557_v51, %v1135_v3  ;;  %v512_v6 = vsub.f32 %v508_v52, %v1137_v4  ;;  %vm526_vm4 = vcmp.eq.f32.partialorder %v508_v52, %v1137_v4 }
 0x2f7   :  { %v576_v7 = vsel %vm575_vm3, %v1054_v33, 128  ;;  %v527_v8 = vsel %vm526_vm4, %v1054_v33, 128  ;;  %v522_v51 = vsel %vm53_vm0, %v521_v47, 0.0  ;;  %vm694_vm3 = vcmp.eq.s32.totalorder %v1054_v33, 53 }
 0x2f8   :  { %v562_v9 = vmul.f32 1.442695, %v561_v5  ;;  %v513_v10 = vmul.f32 1.442695, %v512_v6  ;;  %v1146_v11 = vsel %vm53_vm0, %v576_v7, 2147483647 }
 0x2f9   :  { %v1148_v12 = vpop.xlane.xlu1 %659  ;;  %v1150_v13 = vpop.xlane.xlu0 %609  ;;  %v579_v14 = vshra.s32 %v1146_v11, 16  ;;  %v528_v15 = vsel %vm53_vm0, %v527_v8, 2147483647  ;;  %v578_v2 = vand.u32 65535, %v1146_v11  ;;  %vm699_vm4 = vcmp.eq.s32.totalorder %v1054_v33, 58 }
 0x2fa   :  { %vm675_vm5 = vcmp.eq.f32.partialorder %v657_v56, %v1148_v12  ;;  %v611_v16 = vsub.f32 %v607_v57, %v1150_v13  ;;  %925 = vpow2.f32 %v513_v10  ;;  %vm625_vm6 = vcmp.eq.f32.partialorder %v607_v57, %v1150_v13 }
 0x2fb   :  { %v1157_v17 = vcvt.s32.f32 %v579_v14  ;;  %v530_v18 = vshra.s32 %v528_v15, 16  ;;  %927 = vpow2.f32 %v562_v9  ;;  %v676_v20 = vsel %vm675_vm5, %v1054_v33, 128 }
 0x2fc   :  { %v612_v19 = vmul.f32 1.442695, %v611_v16  ;;  %v626_v21 = vsel %vm625_vm6, %v1054_v33, 128  ;;  %v661_v22 = vsub.f32 %v657_v56, %v1148_v12  ;;  %v677_v26 = vsel %vm53_vm0, %v676_v20, 2147483647 }
 0x2fd   :  { %582 = vmin.xlane.f32.xlu0 %v1157_v17  ;;  %v532_v23 = vcvt.s32.f32 %v530_v18  ;;  %v1163_v25 = vpop.xlane.xlu0 %709  ;;  %v627_v27 = vsel %vm53_vm0, %v626_v21, 2147483647  ;;  %v679_v28 = vshra.s32 %v677_v26, 16  ;;  %v529_v57 = vand.u32 65535, %v528_v15 }
 0x2fe   :  { %vm725_vm7 = vcmp.eq.f32.partialorder %v707_v1, %v1163_v25  ;;  %929 = vpow2.f32 %v612_v19  ;;  %v629_v29 = vshra.s32 %v627_v27, 16  ;;  %v662_v35 = vmul.f32 1.442695, %v661_v22 }
 0x2ff   :  { %533 = vmin.xlane.f32.xlu1 %v532_v23  ;;  %v726_v30 = vsel %vm725_vm7, %v1054_v33, 128  ;;  %v681_v31 = vcvt.s32.f32 %v679_v28  ;;  %v711_v36 = vsub.f32 %v707_v1, %v1163_v25  ;;  %v531_v1 = vcvt.s32.f32 %v529_v57 }
 0x300   :  { %v727_v34 = vsel %vm53_vm0, %v726_v30, 2147483647  ;;  %v631_v37 = vcvt.s32.f32 %v629_v29  ;;  %931 = vpow2.f32 %v662_v35  ;;  %v628_v5 = vand.u32 65535, %v627_v27 }
 0x301   :  { %v729_v38 = vshra.s32 %v727_v34, 16  ;;  %682 = vmin.xlane.f32.xlu0 %v681_v31  ;;  %v712_v40 = vmul.f32 1.442695, %v711_v36  ;;  %v580_v9 = vcvt.s32.f32 %v578_v2  ;;  %v678_v14 = vand.u32 65535, %v677_v26 }
 0x302   :  { %v630_v10 = vcvt.s32.f32 %v628_v5  ;;  %v728_v19 = vand.u32 65535, %v727_v34  ;;  %v621_v22 = vsel %vm53_vm0, %v620_v60, 0.0  ;;  %vm744_vm5 = vcmp.eq.s32.totalorder %v1054_v33, 54 }
 0x303   :  { %632 = vmin.xlane.f32.xlu1 %v631_v37  ;;  %v731_v32 = vcvt.s32.f32 %v729_v38  ;;  %933 = vpow2.f32 %v712_v40  ;;  %v680_v18 = vcvt.s32.f32 %v678_v14  ;;  %vm749_vm6 = vcmp.eq.s32.totalorder %v1054_v33, 59 }
 0x304   :  { %v926_v39 = vpop.eup %925  ;;  %v730_v21 = vcvt.s32.f32 %v728_v19 }
 0x305   :  { %v928_v41 = vpop.eup %927  ;;  %v515_v42 = vsel %vm53_vm0, %v926_v39, 0.0 }
 0x306   :  { %516 = vadd.xlane.f32.xlu0 %v515_v42  ;;  %v564_v44 = vsel %vm53_vm0, %v928_v41, 0.0 }
 0x307   :  { %732 = vmin.xlane.f32.xlu1 %v731_v32 }
 0x308   :  { %v930_v43 = vpop.eup %929 }
 0x309   :  { %v614_v45 = vsel %vm53_vm0, %v930_v43, 0.0 }
 0x30a   :  { %615 = vadd.xlane.f32.xlu0 %v614_v45  ;;  %v932_v52 = vpop.eup %931 }
 0x30b   :  { %565 = vadd.xlane.f32.xlu1 %v564_v44  ;;  %v664_v54 = vsel %vm53_vm0, %v932_v52, 0.0 }
 0x30d   :  { %v934_v55 = vpop.eup %933 }
 0x30e   :  { %v714_v56 = vsel %vm53_vm0, %v934_v55, 0.0 }
 0x30f   :  { %523 = vadd.xlane.f32.xlu1 %v522_v51 }
 0x313   :  { %665 = vadd.xlane.f32.xlu1 %v664_v54 }
 0x317   :  { %715 = vadd.xlane.f32.xlu1 %v714_v56 }
 0x38a   :  { %v1180_v63 = vpop.xlane.xlu0 %582 }
 0x38b   :  { %vm584_vm9 = vcmp.eq.f32.partialorder %v1157_v17, %v1180_v63  ;;  %v571_v17 = vsel %vm53_vm0, %v570_v58, 0.0  ;;  %v589_v62 = vcvt.f32.s32 %v1180_v63  ;;  %vm549_vm0 = vcmp.eq.s32.totalorder %v1054_v33, 55 }
 0x38c   :  { %v534_v0 = vpop.xlane.xlu1 %533  ;;  %v585_v15 = vsel %vm584_vm9, %v580_v9, inf  ;;  %v768_v39 = vsel %vm549_vm0, 1.0, %v972_v24 }
 0x38d   :  { %vm535_vm8 = vcmp.eq.f32.partialorder %v532_v23, %v534_v0  ;;  %v540_v30 = vcvt.f32.s32 %v534_v0  ;;  %v590_v41 = vshll.u32 %v589_v62, 16  ;;  %v776_v62 = vsel %vm694_vm3, 1.0, %v972_v24 }
 0x38e   :  { %v536_v6 = vsel %vm535_vm8, %v531_v1, inf  ;;  %v1185_v8 = vpop.xlane.xlu0 %682 }
 0x38f   :  { %537 = vmin.xlane.f32.xlu0 %v536_v6  ;;  %vm684_vm12 = vcmp.eq.f32.partialorder %v681_v31, %v1185_v8  ;;  %v541_v36 = vshll.u32 %v540_v30, 16  ;;  %v689_v43 = vcvt.f32.s32 %v1185_v8 }
 0x390   :  { %v633_v7 = vpop.xlane.xlu1 %632  ;;  %v685_v20 = vsel %vm684_vm12, %v680_v18, inf }
 0x391   :  { %vm634_vm10 = vcmp.eq.f32.partialorder %v631_v37, %v633_v7  ;;  %v639_v31 = vcvt.f32.s32 %v633_v7  ;;  %v767_v37 = vsel %vm544_vm11, 1.0, %v972_v24  ;;  %v690_v2 = vshll.u32 %v689_v43, 16 }
 0x392   :  { %v635_v16 = vsel %vm634_vm10, %v630_v10, inf  ;;  %v770_v7 = vsel %vm594_vm13, 1.0, %v972_v24 }
 0x393   :  { %586 = vmin.xlane.f32.xlu0 %v585_v15  ;;  %636 = vmin.xlane.f32.xlu1 %v635_v16  ;;  %v517_v58 = vpop.xlane.xlu0 %516  ;;  %v640_v42 = vshll.u32 %v639_v31, 16  ;;  %v771_v16 = vsel %vm599_vm14, 1.0, %v972_v24 }
 0x394   :  { %v1188_v11 = vpop.xlane.xlu1 %732  ;;  %935 = vlog2.f32 %v517_v58 }
 0x395   :  { %vm734_vm15 = vcmp.eq.f32.partialorder %v731_v32, %v1188_v11  ;;  %v739_v5 = vcvt.f32.s32 %v1188_v11 }
 0x396   :  { %v735_v23 = vsel %vm734_vm15, %v730_v21, inf }
 0x397   :  { %572 = vadd.xlane.f32.xlu0 %v571_v17  ;;  %686 = vmin.xlane.f32.xlu1 %v685_v20  ;;  %v616_v28 = vpop.xlane.xlu0 %615  ;;  %v740_v21 = vshll.u32 %v739_v5, 16 }
 0x398   :  { %v566_v60 = vpop.xlane.xlu1 %565 }
 0x399   :  { %937 = vlog2.f32 %v566_v60 }
 0x39a   :  { %939 = vlog2.f32 %v616_v28 }
 0x39b   :  { %622 = vadd.xlane.f32.xlu0 %v621_v22  ;;  %736 = vmin.xlane.f32.xlu1 %v735_v23  ;;  %v773_v23 = vsel %vm644_vm1, 1.0, %v972_v24 }
 0x39c   :  { %v524_v26 = vpop.xlane.xlu1 %523 }
 0x39e   :  { %v936_v27 = vpop.eup %935 }
 0x39f   :  { %672 = vadd.xlane.f32.xlu0 %v671_v46  ;;  %v519_v49 = vmul.f32 0.6931472, %v936_v27 }
 0x3a0   :  { %v666_v29 = vpop.xlane.xlu1 %665 }
 0x3a1   :  { %v520_v61 = vadd.f32 %v519_v49, %v1137_v4  ;;  %941 = vlog2.f32 %v666_v29 }
 0x3a3   :  { %722 = vadd.xlane.f32.xlu0 %v721_v50  ;;  %v938_v59 = vpop.eup %937  ;;  %v525_v34 = vsub.f32 %v520_v61, %v524_v26 }
 0x3a4   :  { %v716_v53 = vpop.xlane.xlu1 %715  ;;  %v940_v32 = vpop.eup %939  ;;  %v568_v4 = vmul.f32 0.6931472, %v938_v59 }
 0x3a5   :  { %943 = vlog2.f32 %v716_v53  ;;  %v547_v44 = vmul.f32 %v767_v37, %v525_v34  ;;  %v618_v55 = vmul.f32 0.6931472, %v940_v32 }
 0x3a6   :  { %v569_v0 = vadd.f32 %v568_v4, %v1135_v3 }
 0x3a7   :  { %v548_v6 = vadd.f32 %v547_v44, %v1084_v48  ;;  %v619_v11 = vadd.f32 %v618_v55, %v1150_v13  ;;  %v774_v13 = vsel %vm649_vm2, 1.0, %v972_v24 }
 0x3ab   :  { %v942_v1 = vpop.eup %941 }
 0x3ac   :  { %v668_v18 = vmul.f32 0.6931472, %v942_v1 }
 0x3ae   :  { %v669_v53 = vadd.f32 %v668_v18, %v1148_v12  ;;  %v779_v12 = vsel %vm744_vm5, 1.0, %v972_v24 }
 0x3af   :  { %v944_v20 = vpop.eup %943 }
 0x3b0   :  { %v718_v29 = vmul.f32 0.6931472, %v944_v20 }
 0x41c   :  { %v538_v35 = vpop.xlane.xlu0 %537 }
 0x41d   :  { %v539_v38 = vcvt.f32.s32 %v538_v35 }
 0x41f   :  { %v542_v40 = vadd.s32 %v541_v36, %v539_v38  ;;  %v777_v38 = vsel %vm699_vm4, 1.0, %v972_v24 }
 0x420   :  { %v587_v45 = vpop.xlane.xlu0 %586  ;;  %v637_v47 = vpop.xlane.xlu1 %636 }
 0x421   :  { %v543_v51 = vcvt.s32.f32 %v542_v40  ;;  %v588_v52 = vcvt.f32.s32 %v587_v45  ;;  %v638_v54 = vcvt.f32.s32 %v637_v47  ;;  %v719_v40 = vadd.f32 %v718_v29, %v1163_v25 }
 0x422   :  { %v780_v47 = vsel %vm749_vm6, 1.0, %v972_v24 }
 0x423   :  { %v552_v56 = vmul.f32 %v768_v39, %v543_v51  ;;  %v591_v57 = vadd.s32 %v590_v41, %v588_v52  ;;  %v641_v63 = vadd.s32 %v640_v42, %v638_v54 }
 0x424   :  { %v573_v8 = vpop.xlane.xlu0 %572  ;;  %v687_v9 = vpop.xlane.xlu1 %686 }
 0x425   :  { %v769_v10 = vadd.s32 4294967286, %v591_v57  ;;  %v772_v14 = vadd.s32 4294967276, %v641_v63  ;;  %v574_v15 = vsub.f32 %v569_v0, %v573_v8  ;;  %v688_v3 = vcvt.f32.s32 %v687_v9 }
 0x426   :  { %v553_v19 = vadd.f32 %v552_v56, %v548_v6 }
 0x427   :  { %v593_v48 = vcvt.s32.f32 %v769_v10  ;;  %v597_v17 = vmul.f32 %v770_v7, %v574_v15  ;;  %v691_v22 = vadd.s32 %v690_v2, %v688_v3  ;;  %v643_v60 = vcvt.s32.f32 %v772_v14 }
 0x428   :  { %v623_v46 = vpop.xlane.xlu0 %622  ;;  %v737_v50 = vpop.xlane.xlu1 %736 }
 0x429   :  { %v602_v58 = vmul.f32 %v771_v16, %v593_v48  ;;  %v598_v26 = vadd.f32 %v597_v17, %v553_v19  ;;  %v624_v27 = vsub.f32 %v619_v11, %v623_v46  ;;  %v775_v28 = vadd.s32 4294967266, %v691_v22 }
 0x42a   :  { %v738_v49 = vcvt.f32.s32 %v737_v50  ;;  %v652_v34 = vmul.f32 %v774_v13, %v643_v60 }
 0x42b   :  { %v603_v61 = vadd.f32 %v602_v58, %v598_v26  ;;  %v647_v30 = vmul.f32 %v773_v23, %v624_v27  ;;  %v693_v35 = vcvt.s32.f32 %v775_v28 }
 0x42c   :  { %v741_v59 = vadd.s32 %v740_v21, %v738_v49  ;;  %v673_v31 = vpop.xlane.xlu0 %672 }
 0x42d   :  { %v648_v36 = vadd.f32 %v647_v30, %v603_v61  ;;  %v674_v37 = vsub.f32 %v669_v53, %v673_v31  ;;  %v702_v42 = vmul.f32 %v777_v38, %v693_v35 }
 0x42e   :  { %v778_v32 = vadd.s32 4294967256, %v741_v59 }
 0x42f   :  { %v653_v4 = vadd.f32 %v652_v34, %v648_v36  ;;  %v697_v39 = vmul.f32 %v776_v62, %v674_v37 }
 0x430   :  { %v723_v41 = vpop.xlane.xlu0 %722  ;;  %v743_v43 = vcvt.s32.f32 %v778_v32 }
 0x431   :  { %v698_v44 = vadd.f32 %v697_v39, %v653_v4  ;;  %v724_v45 = vsub.f32 %v719_v40, %v723_v41 }
 0x432   :  { %v752_v54 = vmul.f32 %v780_v47, %v743_v43 }
 0x433   :  { %v703_v51 = vadd.f32 %v702_v42, %v698_v44  ;;  %v747_v52 = vmul.f32 %v779_v12, %v724_v45 }
 0x435   :  { %v748_v55 = vadd.f32 %v747_v52, %v703_v51 }
 0x437   :  { %v753_v56 = vadd.f32 %v752_v54, %v748_v55 }
 0x439   :  { %754 = vst [vmem:[%s1253_s6] sm:$0xf] %v753_v56 }
 0x43a   :  { %759 = vsyncpa [#allocation3], 1 }

</bundles_post_ra>
